<compile_context>
chip_gen: v7x
topology: tpu7x:2x2x1
jax: 0.10.0
libtpu: 0.0.40
codegen_flags: <defaults>
</compile_context>

<pallas_src>
from functools import partial
from typing import List, Optional, Sequence, Union

import jax
import jax.numpy as jnp
from jax.experimental import pallas as pl
from jax.experimental.pallas import tpu as pltpu

_LANE = 128
_SUBLANE = 8


def _round_up(x: int, m: int) -> int:
    return ((x + m - 1) // m) * m


def _pick_tile(dim: int, candidates: Sequence[int]) -> int:
    # `dim` is always a multiple of 128 by construction, so this terminates
    # with at least 128.
    for c in candidates:
        if dim % c == 0:
            return c
    return dim


# ---------------------------------------------------------------------------
# Fused grouped-linear Pallas kernels: one kernel launch for ALL keys.
# ---------------------------------------------------------------------------
def _grouped_linear_kernel_k1(kid_ref, x_ref, w_ref, b_ref, o_ref):
    # Specialized path: the whole (padded) reduction fits in one K tile.
    # kid_ref : (n_row_tiles,) SMEM  scalar-prefetched tile->key map
    # x_ref   : (tm, tk)        VMEM
    # w_ref   : (1, tk, tn)     VMEM  pre-transposed weight slice of key kid[m]
    # b_ref   : (1, 1, tn)      VMEM
    # o_ref   : (tm, tn)        VMEM
    o_ref[...] = (
        jnp.dot(x_ref[...], w_ref[0], preferred_element_type=jnp.float32)
        + b_ref[0]
    ).astype(o_ref.dtype)


def _grouped_linear_kernel(kid_ref, x_ref, w_ref, b_ref, o_ref, acc_ref):
    # General path: K-tiled reduction with a float32 VMEM accumulator.
    # acc_ref : (tm, tn) f32    VMEM scratch accumulator
    k = pl.program_id(2)

    @pl.when(k == 0)
    def _init():
        acc_ref[...] = jnp.zeros_like(acc_ref)

    acc_ref[...] += jnp.dot(
        x_ref[...], w_ref[0], preferred_element_type=jnp.float32
    )

    @pl.when(k == pl.num_programs(2) - 1)
    def _finalize():
        o_ref[...] = (acc_ref[...] + b_ref[0]).astype(o_ref.dtype)


def _grouped_linear(x_all, w_stacked, b_stacked, key_ids, *, tm, tn, tk):
    total_rows, in_pad = x_all.shape
    n_keys, _, out_pad = w_stacked.shape
    m_tiles = total_rows // tm
    n_tiles = out_pad // tn
    k_tiles = in_pad // tk

    cost = pl.CostEstimate(
        flops=2 * total_rows * in_pad * out_pad,
        transcendentals=0,
        bytes_accessed=4 * (
            n_tiles * total_rows * in_pad      # x streamed once per N sweep
            + n_keys * in_pad * out_pad        # each weight tile ~once (reuse)
            + n_keys * out_pad
            + total_rows * out_pad
        ),
    )

    if k_tiles == 1:
        # Single-pass kernel: no scratch accumulator needed.
        return pl.pallas_call(
            _grouped_linear_kernel_k1,
            out_shape=jax.ShapeDtypeStruct((total_rows, out_pad), x_all.dtype),
            grid_spec=pltpu.PrefetchScalarGridSpec(
                num_scalar_prefetch=1,
                grid=(n_tiles, m_tiles),
                in_specs=[
                    pl.BlockSpec((tm, tk), lambda n, m, kid: (m, 0)),
                    pl.BlockSpec((1, tk, tn), lambda n, m, kid: (kid[m], 0, n)),
                    pl.BlockSpec((1, 1, tn), lambda n, m, kid: (kid[m], 0, n)),
                ],
                out_specs=pl.BlockSpec((tm, tn), lambda n, m, kid: (m, n)),
            ),
            compiler_params=pltpu.CompilerParams(
                dimension_semantics=("parallel", "parallel"),
            ),
            cost_estimate=cost,
        )(key_ids, x_all, w_stacked, b_stacked)

    return pl.pallas_call(
        _grouped_linear_kernel,
        out_shape=jax.ShapeDtypeStruct((total_rows, out_pad), x_all.dtype),
        grid_spec=pltpu.PrefetchScalarGridSpec(
            num_scalar_prefetch=1,
            grid=(n_tiles, m_tiles, k_tiles),
            in_specs=[
                pl.BlockSpec((tm, tk), lambda n, m, k, kid: (m, k)),
                pl.BlockSpec((1, tk, tn), lambda n, m, k, kid: (kid[m], k, n)),
                pl.BlockSpec((1, 1, tn), lambda n, m, k, kid: (kid[m], 0, n)),
            ],
            out_specs=pl.BlockSpec((tm, tn), lambda n, m, k, kid: (m, n)),
            scratch_shapes=[pltpu.VMEM((tm, tn), jnp.float32)],
        ),
        compiler_params=pltpu.CompilerParams(
            dimension_semantics=("parallel", "parallel", "arbitrary"),
        ),
        cost_estimate=cost,
    )(key_ids, x_all, w_stacked, b_stacked)


@partial(jax.jit, static_argnames=("tm", "tn", "tk", "samples", "out_feats"))
def _forward(blocks, w_stacked, b_stacked, key_ids, *,
             tm, tn, tk, samples, out_feats):
    """Pad + concat blocks, run one fused kernel, slice per-key outputs."""
    in_pad = w_stacked.shape[1]
    padded = []
    for x, s in zip(blocks, samples):
        rows = _round_up(s, tm)
        padded.append(jnp.pad(x, ((0, rows - s), (0, in_pad - x.shape[1]))))
    x_all = jnp.concatenate(padded, axis=0)

    y_all = _grouped_linear(x_all, w_stacked, b_stacked, key_ids,
                            tm=tm, tn=tn, tk=tk)

    outs = []
    off = 0
    for s, of in zip(samples, out_feats):
        outs.append(y_all[off:off + s, :of])
        off += _round_up(s, tm)
    return tuple(outs)


# ---------------------------------------------------------------------------
# Module-map style wrapper (one Linear per TensorMap key)
# ---------------------------------------------------------------------------
class LinearMap:
    """JAX/Pallas analogue of metatensor.learn.nn.Linear.

    Holds one (weight, bias) pair per key and applies the i-th linear to the
    i-th block of the input "tensor map" (here: a list of 2-D arrays).
    """

    def __init__(
        self,
        n_keys: int,
        in_features: Union[int, Sequence[int]],
        out_features: Union[int, Sequence[int]],
        *,
        bias: Union[bool, Sequence[bool]] = True,
        dtype=jnp.float32,
        seed: int = 0,
    ):
        self.n_keys = n_keys
        self.in_features = self._broadcast_param(in_features, n_keys)
        self.out_features = self._broadcast_param(out_features, n_keys)
        self.bias_flags = self._broadcast_param(bias, n_keys)

        key = jax.random.PRNGKey(seed)
        self.weights: List[jax.Array] = []      # torch layout (out_f, in_f)
        self.biases: List[Optional[jax.Array]] = []
        for i in range(n_keys):
            key, wk, bk = jax.random.split(key, 3)
            fan_in = self.in_features[i]
            bound = 1.0 / (fan_in ** 0.5)
            w = jax.random.uniform(
                wk, (self.out_features[i], fan_in),
                dtype=dtype, minval=-bound, maxval=bound,
            )
            self.weights.append(w)
            if self.bias_flags[i]:
                b = jax.random.uniform(
                    bk, (self.out_features[i],),
                    dtype=dtype, minval=-bound, maxval=bound,
                )
                self.biases.append(b)
            else:
                self.biases.append(None)

        # --- One-time packing: lane-dense, pre-transposed, stacked --------
        self.in_pad = _round_up(max(self.in_features), _LANE)
        self.out_pad = _round_up(max(self.out_features), _LANE)

        w_stacked = jnp.zeros((n_keys, self.in_pad, self.out_pad), dtype)
        b_stacked = jnp.zeros((n_keys, 1, self.out_pad), dtype)
        for i, w in enumerate(self.weights):
            # store transposed once: (in_f, out_f) zero-padded to (in_pad, out_pad)
            w_stacked = w_stacked.at[i, : w.shape[1], : w.shape[0]].set(w.T)
            if self.biases[i] is not None:
                b_stacked = b_stacked.at[i, 0, : self.out_features[i]].set(
                    self.biases[i]
                )
        self.w_stacked = w_stacked
        self.b_stacked = b_stacked

    @staticmethod
    def _broadcast_param(p, n):
        if isinstance(p, (list, tuple)):
            assert len(p) == n
            return list(p)
        return [p] * n

    def __call__(self, blocks: Sequence[jax.Array]) -> List[jax.Array]:
        assert len(blocks) == self.n_keys
        samples = tuple(int(b.shape[0]) for b in blocks)

        # Tile sizes: M-tile adapted to block sizes (multiple of 8, <=128);
        # N/K tiles are lane-dense multiples of 128 that divide the padded dims.
        tm = max(_SUBLANE, min(128, _round_up(max(samples), _SUBLANE)))
        tn = _pick_tile(self.out_pad, (512, 256, 128))
        tk = _pick_tile(self.in_pad, (512, 256, 128))

        tiles_per_key = [_round_up(s, tm) // tm for s in samples]
        key_ids = jnp.array(
            [i for i, t in enumerate(tiles_per_key) for _ in range(t)],
            dtype=jnp.int32,
        )

        outs = _forward(
            tuple(blocks), self.w_stacked, self.b_stacked, key_ids,
            tm=tm, tn=tn, tk=tk,
            samples=samples, out_feats=tuple(self.out_features),
        )
        return list(outs)


# ---------------------------------------------------------------------------
# Reference (pure JAX) for sanity checking
# ---------------------------------------------------------------------------
def _reference(blocks, weights, biases):
    out = []
    for x, w, b in zip(blocks, weights, biases):
        y = x @ w.T
        if b is not None:
            y = y + b
        out.append(y)
    return out


def _run_case(n_keys, samples, in_features, out_features, bias_flags, seed,
              atol, rtol):
    key = jax.random.PRNGKey(seed)
    in_features = LinearMap._broadcast_param(in_features, n_keys)
    out_features_l = LinearMap._broadcast_param(out_features, n_keys)

    blocks = []
    for i in range(n_keys):
        key, sub = jax.random.split(key)
        blocks.append(
            jax.random.normal(sub, (samples[i], in_features[i]), dtype=jnp.float32)
        )

    linear = LinearMap(
        n_keys, in_features, out_features, bias=bias_flags,
        dtype=jnp.float32, seed=seed,
    )

    outs = linear(blocks)
    outs = [jax.block_until_ready(o) for o in outs]

    refs = _reference(blocks, linear.weights, linear.biases)
    for o, r, s, of in zip(outs, refs, samples, out_features_l):
        assert o.shape == (s, of), o.shape
        assert jnp.allclose(o, r, atol=atol, rtol=rtol), "mismatch vs reference"


if __name__ == "__main__":
    # A small synthetic "TensorMap": several keys, each block (samples, in_f).
    # TODO(synk): metatensor TensorMap/Labels metadata (keys, out_properties
    # relabeling) has no Pallas equivalent; blocks are plain arrays here.

    # Case 1: small features -> single-K-tile specialized kernel path.
    _run_case(
        n_keys=3,
        samples=[8, 16, 8],
        in_features=[16, 32, 16],
        out_features=32,
        bias_flags=[True, True, False],
        seed=0,
        atol=1e-5, rtol=1e-5,
    )

    # Case 2: larger, non-power-of-two features -> K-tiled accumulator path.
    _run_case(
        n_keys=2,
        samples=[24, 40],
        in_features=[300, 200],
        out_features=[160, 96],
        bias_flags=[True, False],
        seed=1,
        atol=1e-4, rtol=1e-4,
    )

    print("KERNEL_OK")
</pallas_src>

<mosaic_0001>
module attributes {stable_mosaic.version = 11 : i64} {
  func.func @_grouped_linear_kernel_k1(%arg0: i32, %arg1: i32, %arg2: memref<3xi32, #tpu.memory_space<smem>>, %arg3: memref<16x128xf32, #tpu.memory_space<vmem>>, %arg4: memref<1x128x128xf32, #tpu.memory_space<vmem>>, %arg5: memref<1x1x128xf32, #tpu.memory_space<vmem>>, %arg6: memref<16x128xf32, #tpu.memory_space<vmem>>) attributes {dimension_semantics = [#tpu.dimension_semantics<parallel>, #tpu.dimension_semantics<parallel>], iteration_bounds = array<i64: 1, 3>, scalar_prefetch = 1 : i64, scratch_operands = 0 : i64, tpu.core_type = #tpu.core_type<tc>, window_params = [{transform_indices = @transform_0, window_bounds = array<i64: 16, 128>}, {transform_indices = @transform_1, window_bounds = array<i64: 1, 128, 128>}, {transform_indices = @transform_2, window_bounds = array<i64: 1, 1, 128>}, {transform_indices = @transform_3, window_bounds = array<i64: 16, 128>}]} {
    %c0 = arith.constant 0 : index
    %c0_0 = arith.constant 0 : index
    %0 = vector.load %arg3[%c0, %c0_0] : memref<16x128xf32, #tpu.memory_space<vmem>>, vector<16x128xf32>
    %c0_1 = arith.constant 0 : index
    %c0_2 = arith.constant 0 : index
    %c0_3 = arith.constant 0 : index
    %1 = vector.load %arg4[%c0_1, %c0_2, %c0_3] : memref<1x128x128xf32, #tpu.memory_space<vmem>>, vector<1x128x128xf32>
    %2 = vector.shape_cast %1 : vector<1x128x128xf32> to vector<128x128xf32>
    %cst = arith.constant dense<0.000000e+00> : vector<16x128xf32>
    %3 = tpu.matmul %0, %2, %cst {dimension_numbers = #tpu.dot_dimension_numbers<[1], [0], [0], [1], [0, 0, 1, 1], [], []>} : vector<16x128xf32>, vector<128x128xf32>, vector<16x128xf32> -> vector<16x128xf32>
    %c0_4 = arith.constant 0 : index
    %c0_5 = arith.constant 0 : index
    %c0_6 = arith.constant 0 : index
    %4 = vector.load %arg5[%c0_4, %c0_5, %c0_6] : memref<1x1x128xf32, #tpu.memory_space<vmem>>, vector<1x1x128xf32>
    %5 = vector.shape_cast %4 : vector<1x1x128xf32> to vector<1x128xf32>
    %6 = vector.broadcast %5 : vector<1x128xf32> to vector<16x128xf32>
    %7 = arith.addf %3, %6 : vector<16x128xf32>
    %c0_7 = arith.constant 0 : index
    %c0_8 = arith.constant 0 : index
    %8 = vector.load %arg6[%c0_7, %c0_8] : memref<16x128xf32, #tpu.memory_space<vmem>>, vector<16x128xf32>
    tpu.vector_store %arg6[%c0_7, %c0_8], %7 {strides = array<i32>} : memref<16x128xf32, #tpu.memory_space<vmem>>, vector<16x128xf32>,
    return
  }
  func.func @transform_0(%arg0: i32, %arg1: i32, %arg2: memref<3xi32, #tpu.memory_space<smem>>) -> (i32, i32) {
    %c0_i32 = arith.constant 0 : i32
    %c0_i32_0 = arith.constant 0 : i32
    return %arg1, %c0_i32 : i32, i32
  }
  func.func @transform_1(%arg0: i32, %arg1: i32, %arg2: memref<3xi32, #tpu.memory_space<smem>>) -> (i32, i32, i32) {
    %0 = arith.index_cast %arg1 : i32 to index
    %1 = memref.load %arg2[%0] : memref<3xi32, #tpu.memory_space<smem>>
    %c0_i32 = arith.constant 0 : i32
    %c0_i32_0 = arith.constant 0 : i32
    return %1, %c0_i32, %arg0 : i32, i32, i32
  }
  func.func @transform_2(%arg0: i32, %arg1: i32, %arg2: memref<3xi32, #tpu.memory_space<smem>>) -> (i32, i32, i32) {
    %0 = arith.index_cast %arg1 : i32 to index
    %1 = memref.load %arg2[%0] : memref<3xi32, #tpu.memory_space<smem>>
    %c0_i32 = arith.constant 0 : i32
    %c0_i32_0 = arith.constant 0 : i32
    return %1, %c0_i32, %arg0 : i32, i32, i32
  }
  func.func @transform_3(%arg0: i32, %arg1: i32, %arg2: memref<3xi32, #tpu.memory_space<smem>>) -> (i32, i32) {
    %c0_i32 = arith.constant 0 : i32
    return %arg1, %arg0 : i32, i32
  }
}

</mosaic_0001>

<bundles_post_ra>
// kernel: _forward.1
= control target key start
LH: loop header
LB: loop body
LE: loop exit
PB: predicated region body
PF: predicated region fallthrough
CT: control target
= control target key end

     0   :  { %s945_s0 = inlined_call_operand.vmem [shape: s32[3], index: 0, kind: input, shape index: {}]   ;;  %s946_s1 = inlined_call_operand.vmem [shape: f32[48,128], index: 1, kind: input, shape index: {}]   ;;  %s947_s2 = inlined_call_operand.hbm [shape: f32[3,128,128], index: 2, kind: input, shape index: {}]   ;;  %s948_s3 = inlined_call_operand.vmem [shape: f32[3,1,128], index: 3, kind: input, shape index: {}]   ;;  %s949_s4 = inlined_call_operand.vmem [shape: f32[48,128], index: 4, kind: output, shape index: {}]  }
   0x1   :  { %s9_s17 = sshll.u32 %s945_s0, 4  ;;  %s10_s17 = int_to_ptr.vmem [resolvable:$true] %s9_s17 }
   0x2   :  { %s658_s18 = scalar_lea.vmem %s10_s17, 16  ;;  %p663_p1 = scmp.lt.s32.totalorder %s10_s17, %s10_s17 }
   0x3   :  { %p659_p0 = scmp.ne.s32.totalorder %s10_s17, %s658_s18  ;;  %p664_p2 = scmp.lt.s32.totalorder %s658_s18, %s658_s18 }
   0x5   :  { %p665_p3 = por %p664_p2, %p663_p1 }
   0x7   :  { %p666_p4 = pnand %p665_p3, %p659_p0 }
   0x9   :  { %669 = shalt.err (!%p666_p4)  }
   0xa   :  { %s754_s19 = smov [#allocation3]  }
   0xb   :  { %12 = dma.vmem_to_smem %s10_s17, 16, %s754_s19, [#allocation2] }
   0xc   :  { %724 = dma.done.wait [#allocation2], 16 }
   0xd   :  { %725 = vsyncadd [#allocation2], 4294967280 }
   0xe   :  { %14 = sfence }
   0xf   :  { %15 = vsyncpa [#allocation5], 0 }
  0x10   :  { %17 = vsyncpa [#allocation5 + $0x1], 0  ;;  %s786_s20 = smov 0   ;;  %s788_s21 = smov 0  }
  0x11   :  { %s790_s0 = smov 0   ;;  %s792_s22 = smov 0  }
  0x12   :  { %s794_s23 = smov 0   ;;  %s796_s24 = smov 0  }
  0x13 LB: > { %s32_s25 = sadd.s32 1, %s748_s23  ;;  %s494_s26 = sadd.s32 4294967295, %s752_s24   ;;  %s752_s24 = sphi %s796_s24, %s23_s24   ;;  %s748_s23 = sphi %s794_s23, %s959_s23   ;;  %s744_s22 = sphi %s792_s22, %s958_s22   ;;  %s740_s0 = sphi %s790_s0, %s957_s0   ;;  %s736_s21 = sphi %s788_s21, %s956_s21   ;;  %s732_s20 = sphi %s786_s20, %s955_s20  }
  0x14   : > { %p33_p5 = scmp.ge.s32.totalorder %s32_s25, 3  ;;  %s65_s27 = sld [smem:[#allocation3 + %s748_s23]] }
  0x15   : > { %p79_p6 = scmp.ne.s32.totalorder %s740_s0, %s736_s21  ;;  %p80_p7 = scmp.eq.s32.totalorder %s752_s24, 0 }
  0x16   : > { %s961_s25 = smov (%p33_p5, %s32_s25), 0  ;;  %p85_p8 = scmp.ne.s32.totalorder %s736_s21, %s732_s20 }
  0x17   : > { %s66_s28 = sld [smem:[#allocation3 + %s961_s25]]  ;;  %p86_p9 = scmp.eq.s32.totalorder %s494_s26, 0 }
  0x18   : > { %s176_s30 = sand.u32 1, %s740_s0   ;;  %p81_p11 = por %p80_p7, %p79_p6 }
  0x19   : > { %p824_p10 = por %p86_p9, %p85_p8  ;;  %s72_s5 = sadd.s32 1, %s740_s0 }
  0x1a   : > { %p606_p12 = scmp.lt.s32.totalorder %s752_s24, 3  ;;  %s498_s7 = sshll.u32 %s176_s30, 7 }
  0x1b   : > { %s951_s29 = scalar_select %p824_p10, 1, 0 }
  0x1c   : > { %p831_p0 = pnand %p606_p12, %p81_p11  ;;  %p501_p1 = scmp.ge.s32.totalorder %s752_s24, 1 }
  0x1d   : > { %s67_s6 = ssub.s32 %s65_s27, %s66_s28  ;;  %p208_p2 = scmp.lt.s32.totalorder %s752_s24, 4 }
  0x1e   : > { %p70_p13 = scmp.eq.s32.totalorder %s67_s6, 0  ;;  %s180_s13 = scalar_lea.vmem [#allocation4], %s498_s7 }
  0x1f   : > { %s596_s9 = scalar_select %p81_p11, [#allocation3], [#allocation6] }
  0x20   : > { %s836_s10 = scalar_select %p70_p13, %s740_s0, %s72_s5  }
  0x21   : > { %s597_s11 = scalar_select %p81_p11, %s748_s23, 0 }
  0x22   : > { %s963_s9 = smov (!%p606_p12, %s596_s9), [#allocation7]  ;;  %s189_s14 = sshll.u32 %s180_s13, 4  ;;  %s845_s14 = int_to_ptr.vmem [resolvable:$true] %s189_s14 }
  0x23   : > { %s965_s11 = smov (!%p606_p12, %s597_s11), 0  ;;  %p841_p3 = pnand %p501_p1, %p208_p2 }
  0x24   : > { %s181_s12 = sld [smem:[%s963_s9 + %s965_s11]]  ;;  %s852_s20 = scalar_lea.sflag [#allocation5], %s176_s30 }
  0x25   : > { %p672_p5 = pneg %p831_p0  ;;  %s675_s5 = scalar_lea.hbm %s947_s2, 6144 }
  0x2a   : > { %s510_s16 = sshll.u32 %s181_s12, 11 }
  0x2b   : > { %s850_s19 = scalar_lea.hbm %s947_s2, %s510_s16 }
  0x2c   : > { %s670_s26 = scalar_lea.hbm %s850_s19, 2048  ;;  %p676_p8 = scmp.lt.u32.totalorder %s850_s19, %s947_s2 }
  0x2d   : > { %p671_p4 = scmp.ne.s32.totalorder %s850_s19, %s670_s26  ;;  %p677_p9 = scmp.lt.u32.totalorder %s675_s5, %s670_s26 }
  0x2e   : > { %p679_p12 = scmp.lt.u32.totalorder %s670_s26, %s850_s19 }
  0x2f   : > { %p673_p6 = pnand %p672_p5, %p671_p4  ;;  %p678_p11 = por %p677_p9, %p676_p8 }
  0x31   : > { %p674_p7 = pneg %p673_p6  ;;  %p680_p13 = por %p679_p12, %p678_p11 }
  0x33   : > { %p681_p1 = pnand %p680_p13, %p674_p7 }
  0x35   : > { %684 = shalt.err (!%p681_p1)
}
  0x36   : > { %s685_s30 = scalar_lea.vmem %s845_s14, 2048  ;;  %s755_s9 = smov [#allocation4]  }
  0x37   : > { %p686_p2 = scmp.ne.s32.totalorder %s845_s14, %s685_s30  ;;  %s690_s11 = sshll.u32 %s755_s9, 4  ;;  %s691_s11 = int_to_ptr.vmem [resolvable:$false] %s690_s11 }
  0x38   : > { %s692_s12 = scalar_lea.vmem %s691_s11, 4096  ;;  %p693_p10 = scmp.lt.s32.totalorder %s845_s14, %s691_s11 }
  0x39   : > { %p688_p4 = pnand %p686_p2, %p672_p5  ;;  %p694_p8 = scmp.lt.s32.totalorder %s692_s12, %s685_s30 }
  0x3b   : > { %p689_p6 = pneg %p688_p4  ;;  %p695_p9 = por %p694_p8, %p693_p10 }
  0x3d   : > { %p696_p11 = pnand %p695_p9, %p689_p6 }
  0x3f   : > { %699 = shalt.err (!%p696_p11)
}
  0x40   : > { %s756_s13 = smov 128   ;;  %s757_s16 = smov 8  }
  0x41   : > { %605 = dma.hbm_to_vmem [thread:$0]  (!%p831_p0), %s850_s19, 2048, %s845_s14, %s852_s20, %s756_s13, %s756_s13, %s757_s16  }
  0x42   : > { %212 = sbr.rel (%p841_p3) target bundleno = 325 (0x145), region = 32  ;;  %s214_s17 = sand.u32 (!%p841_p3), 1, %s736_s21  }
  0x43   : > { %s502_s18 = sshll.u32 (!%p841_p3), %s214_s17, 7  ;;  %s215_s26 = scalar_lea.sflag (!%p841_p3), [#allocation5], %s214_s17 }
  0x44   : > { %s883_s27 = scalar_lea.vmem (!%p841_p3), [#allocation4], %s502_s18  ;;  %p954_p10 = scmp.ne.s32.totalorder (!%p841_p3), %s951_s29, 0 }
  0x49   : > { %727 = dma.done.wait (%p954_p10), %s215_s26, 2048  }
  0x4a   : > { %729 = vsyncadd (%p954_p10), %s215_s26, 4294965248  ;;  %s503_s8 = sshll.u32 %s744_s22, 1  ;;  %v282_v0 = vld [vmem:[%s883_s27] sm:$0xff]  ;;  %v283_v1 = vld [vmem:[%s883_s27 + $0x8] sm:$0xff]  ;;  %s263_s20 = sld [smem:[#allocation3 + %s744_s22]] }
  0x4b   : > { %p257_p0 = scmp.lt.s32.totalorder %s503_s8, 5  ;;  %v284_v2 = vld [vmem:[%s883_s27 + $0x10] sm:$0xff]  ;;  %v564_v3 = vpack.c.bf16 %v283_v1, %v282_v0  ;;  %v285_v4 = vld [vmem:[%s883_s27 + $0x18] sm:$0xff]  ;;  %v286_v6 = vld [vmem:[%s883_s27 + $0x20] sm:$0xff] }
  0x4c   : > { %v568_v5 = vpack.c.bf16 %v285_v4, %v284_v2  ;;  %v287_v7 = vld [vmem:[%s883_s27 + $0x28] sm:$0xff]  ;;  %v288_v10 = vld [vmem:[%s883_s27 + $0x30] sm:$0xff]  ;;  %v289_v11 = vld [vmem:[%s883_s27 + $0x38] sm:$0xff] }
  0x4d   : > { %s967_s8 = smov (!%p257_p0, %s503_s8), 5  ;;  %565 = vmatprep.subr.bf16.mxu0 %v564_v3  ;;  %v572_v8 = vpack.c.bf16 %v287_v7, %v286_v6  ;;  %v576_v12 = vpack.c.bf16 %v289_v11, %v288_v10  ;;  %v290_v13 = vld [vmem:[%s883_s27 + $0x40] sm:$0xff]  ;;  %v291_v14 = vld [vmem:[%s883_s27 + $0x48] sm:$0xff]  ;;  %v292_v16 = vld [vmem:[%s883_s27 + $0x50] sm:$0xff] }
  0x4e   : > { %s504_s14 = sshll.u32 %s967_s8, 3  ;;  %567 = vmatpush3.bf16.msra.mxu0 %v564_v3  ;;  %v580_v15 = vpack.c.bf16 %v291_v14, %v290_v13  ;;  %v293_v17 = vld [vmem:[%s883_s27 + $0x58] sm:$0xff]  ;;  %v294_v19 = vld [vmem:[%s883_s27 + $0x60] sm:$0xff]  ;;  %v295_v20 = vld [vmem:[%s883_s27 + $0x68] sm:$0xff] }
  0x4f   : > { %s904_s19 = scalar_lea.vmem %s946_s1, %s504_s14  ;;  %569 = vmatprep.subr.bf16.mxu0 %v568_v5  ;;  %v584_v18 = vpack.c.bf16 %v293_v17, %v292_v16  ;;  %v588_v21 = vpack.c.bf16 %v295_v20, %v294_v19  ;;  %v296_v22 = vld [vmem:[%s883_s27 + $0x70] sm:$0xff]  ;;  %v297_v23 = vld [vmem:[%s883_s27 + $0x78] sm:$0xff]  ;;  %s278_s9 = scalar_lea.vmem %s949_s4, %s504_s14 }
  0x50   : > { %v280_v9 = vld [vmem:[%s904_s19] sm:$0xff]  ;;  %v592_v24 = vpack.c.bf16 %v297_v23, %v296_v22  ;;  %v281_v25 = vld [vmem:[%s904_s19 + $0x8] sm:$0xff]  ;;  %p264_p3 = scmp.lt.s32.totalorder %s263_s20, 2 }
  0x51   : > { %561 = vmatprep.mubr.f32.mxu0 %v280_v9 }
  0x52   : > { %571 = vmatpush3.bf16.msra.mxu0 %v568_v5  ;;  %s969_s20 = smov (!%p264_p3, %s263_s20), 2 }
  0x53   : > { %573 = vmatprep.subr.bf16.mxu0 %v572_v8  ;;  %s269_s6 = scalar_lea.vmem %s948_s3, %s969_s20 }
  0x54   : > { %v507_v26 = vld [vmem:[%s269_s6] ss:$0 sm:$0xff] }
  0x56   : > { %575 = vmatpush3.bf16.msra.mxu0 %v572_v8 }
  0x57   : > { %577 = vmatprep.subr.bf16.mxu0 %v576_v12 }
  0x5a   : > { %579 = vmatpush3.bf16.msra.mxu0 %v576_v12 }
  0x5b   : > { %581 = vmatprep.subr.bf16.mxu0 %v580_v15 }
  0x5e   : > { %583 = vmatpush3.bf16.msra.mxu0 %v580_v15 }
  0x5f   : > { %585 = vmatprep.subr.bf16.mxu0 %v584_v18 }
  0x62   : > { %587 = vmatpush3.bf16.msra.mxu0 %v584_v18 }
  0x63   : > { %589 = vmatprep.subr.bf16.mxu0 %v588_v21 }
  0x66   : > { %591 = vmatpush3.bf16.msra.mxu0 %v588_v21 }
  0x67   : > { %593 = vmatprep.subr.bf16.mxu0 %v592_v24 }
  0x6a   : > { %595 = vmatpush3.bf16.msra.mxu0 %v592_v24 }
  0x6d   : > { %562 = vmatmul.mubr.f32.vlgmr.msra.gmra.mrb[0].mxu0 %v281_v25 }
 0x140   : > { %v563_v27 = vpop.f32.mrb[0].mxu0 }
 0x141   : > { %v371_v28 = vpop.f32.mrb[1].mxu0  ;;  %v377_v30 = vadd.f32 %v563_v27, %v507_v26 }
 0x142   : > { %v372_v29 = vadd.f32 %v507_v26, %v371_v28 }
 0x143   : > { %381 = vst [vmem:[%s278_s9 + $0x8] sm:$0xff] %v377_v30 }
 0x144   : > { %380 = vst [vmem:[%s278_s9] sm:$0xff] %v372_v29 }
 0x145 PF: > { %s23_s24 = sadd.s32 1, %s752_s24   ;;  %s955_s20 = smov %s736_s21 }
 0x146   : > { %p20_p5 = scmp.ge.s32.totalorder %s23_s24, 5   ;;  %s956_s21 = smov %s740_s0 }
 0x147   : > { %s957_s0 = smov %s836_s10  ;;  %s958_s22 = smov %s748_s23 }
 0x148   : > { %s959_s23 = smov %s961_s25  ;;  %22 = sbr.rel (!%p20_p5) target bundleno = 19 (0x13), region = 78 }
 0x14f   :  { %410 = vsyncpa [#allocation5], 1 }
 0x150   :  { %412 = vsyncpa [#allocation5 + $0x1], 1 }

</bundles_post_ra>
